<compile_context>
chip_gen: v5e
topology: v5e:2x2
jax: 0.10.0
libtpu: 0.0.40
codegen_flags: <defaults>
</compile_context>

<pallas_src>
import math

import jax
import jax.numpy as jnp
from jax.experimental import pallas as pl
from jax.experimental.pallas import tpu as pltpu


def _pick_row_tile(H, W, target_lanes, min_tiles):
    """Rows per spatial tile (TH) and the (possibly padded) row count Hp.

    TH*W is a multiple of 128 whenever more than one tile is used (lane-dense,
    BlockSpec-legal).  If H has no suitable divisor, H is padded up instead of
    falling back to one unbounded full-image block (VMEM safety, see review).
    """
    row_q = 128 // math.gcd(W, 128)            # TH granularity so TH*W % 128 == 0
    if H * W <= target_lanes and min_tiles <= 1:
        return H, H                            # single full-image tile
    want = max(min(target_lanes // W, -(-H // min_tiles)), 1)
    max_th = max((want // row_q) * row_q, row_q)
    best = 0
    th = row_q
    while th <= max_th:
        if H % th == 0:
            best = th
        th += row_q
    if best:
        return best, H
    if max_th >= H:
        return H, H                            # cannot split at this granularity
    th = max_th                                # pad H up to a multiple of th
    return th, -(-H // th) * th


def _build_halos(xH, TH, pad):
    """(N, T_r, C, 2*pad*W): the `pad` rows just above / below each row tile
    (zeros at the image border) -- the only data a tile needs beyond its rows."""
    N, C, Hp, W = xH.shape
    T_r = Hp // TH
    zrow = jnp.zeros((N, C, pad, W), xH.dtype)
    pieces = []
    for i in range(T_r):
        t0, t1 = i * TH, i * TH + TH
        if t0 - pad >= 0:
            top = xH[:, :, t0 - pad:t0]
        elif t0 > 0:
            top = jnp.concatenate([zrow[:, :, :pad - t0], xH[:, :, :t0]], axis=2)
        else:
            top = zrow
        avail = Hp - t1
        if avail >= pad:
            bot = xH[:, :, t1:t1 + pad]
        elif avail > 0:
            bot = jnp.concatenate([xH[:, :, t1:], zrow[:, :, :pad - avail]], axis=2)
        else:
            bot = zrow
        pieces.append(jnp.concatenate([top, bot], axis=2))     # (N, C, 2*pad, W)
    halos = jnp.stack(pieces, axis=1)                          # (N, T_r, C, 2*pad, W)
    return halos.reshape(N, T_r, C, 2 * pad * W)


def dense_block_forward(x_nchw, weight, bias, kernel_size, *,
                        target_lanes=32768, use_bf16_matmul=False):
    """DenseBlock forward: cat([x, relu(conv2d(x, w, b))], axis=1).

    x_nchw : (N, C, H, W)
    weight : (G, C, K, K)   PyTorch Conv2d OIHW layout
    bias   : (G,)
    returns (N, C + G, H, W)
    """
    assert kernel_size % 2 == 1, "padding=k//2 is 'same' only for odd kernel_size"
    N, C, H, W = x_nchw.shape
    G = weight.shape[0]
    K = kernel_size
    pad = K // 2
    KKC = K * K * C
    dtype = x_nchw.dtype
    pat_dtype = jnp.bfloat16 if use_bf16_matmul else dtype

    min_tiles = 2 if N == 1 else 1             # keep both v7x TensorCores busy
    TH, Hp = _pick_row_tile(H, W, target_lanes, min_tiles)
    T_r = Hp // TH
    T = TH * W                                 # lanes per grid step
    HALO = pad * W
    LW = T + 2 * HALO + 2 * pad                # flat window: guards+halo+tile+halo+guards

    xH = x_nchw if Hp == H else jnp.pad(
        x_nchw, ((0, 0), (0, 0), (0, Hp - H), (0, 0)))
    x_flat = xH.reshape(N, C, Hp * W)                          # free reshape
    halos = _build_halos(xH, TH, pad)                          # tiny
    w_idx = (jnp.arange(T, dtype=jnp.int32) % W).reshape(1, T)  # column index per lane

    # Conv weights, tap-major / channel-minor: row index t*C + c with t = kh*K + kw.
    w_mat = jnp.transpose(weight, (0, 2, 3, 1)).reshape(G, KKC).astype(pat_dtype)
    b_col = bias.astype(jnp.float32).reshape(G, 1)

    def kernel(widx_ref, x_ref, halo_ref, w_ref, b_ref, o_ref, win_ref, pat_ref):
        # widx_ref : (1, T) int32    column (w) coordinate of each lane
        # x_ref    : (C, T)          row tile of x, spatial flattened on lanes
        # halo_ref : (C, 2*pad*W)    rows just above / below the tile
        # w_ref    : (G, KKC)        conv weights
        # b_ref    : (G, 1)          bias
        # o_ref    : (C+G, T)        [x ; relu(conv(x)+b)]
        # win_ref  : (C, LW) VMEM    zero-padded flat window scratch
        # pat_ref  : (KKC, T) VMEM   in-VMEM im2col patches scratch

        # --- assemble the flat window: [guard | halo above | tile | halo below | guard]
        win_ref[:, :pad] = jnp.zeros((C, pad), win_ref.dtype)
        win_ref[:, LW - pad:] = jnp.zeros((C, pad), win_ref.dtype)
        halo = halo_ref[...]
        win_ref[:, pad:pad + HALO] = halo[:, :HALO]
        win_ref[:, pad + HALO + T:pad + 2 * HALO + T] = halo[:, HALO:]
        win_ref[:, pad + HALO:pad + HALO + T] = x_ref[...]

        # --- in-VMEM im2col: one shifted, column-masked slice per tap ----------
        w_col = widx_ref[...]                                  # (1, T)
        for t in range(K * K):
            kh, kw = divmod(t, K)
            tap = win_ref[:, kh * W + kw: kh * W + kw + T]     # (C, T)
            dk = kw - pad
            if dk < 0:                                         # left-border wrap -> 0
                tap = jnp.where(w_col >= -dk, tap, 0.0)
            elif dk > 0:                                       # right-border wrap -> 0
                tap = jnp.where(w_col < W - dk, tap, 0.0)
            pat_ref[t * C:(t + 1) * C, :] = tap.astype(pat_ref.dtype)

        # --- one MXU contraction over C*K*K, bias add, ReLU --------------------
        y = jnp.dot(w_ref[...], pat_ref[...], preferred_element_type=jnp.float32)
        y = jnp.maximum(y + b_ref[...], 0.0)

        # --- fused concat: bit-exact passthrough of x, then the conv rows ------
        o_ref[:C, :] = x_ref[...]
        o_ref[C:, :] = y.astype(o_ref.dtype)

    # Explicit VMEM budget (review: v7x has only 64 MiB physical / 32 MiB scoped).
    bytes_per_lane = (2 * 4 * (C + (C + G) + 1)       # double-buffered x, out, w_idx
                      + 4 * C                         # window scratch
                      + KKC * (2 if use_bf16_matmul else 4))   # patches scratch
    vmem_limit = min(max(int(1.5 * bytes_per_lane * T) + (4 << 20), 16 << 20), 48 << 20)

    out_flat = pl.pallas_call(
        kernel,
        out_shape=jax.ShapeDtypeStruct((N, C + G, Hp * W), dtype),
        grid_spec=pltpu.PrefetchScalarGridSpec(
            num_scalar_prefetch=0,
            grid=(N, T_r),
            in_specs=[
                pl.BlockSpec((1, T), lambda n, i: (0, 0)),                  # w index
                pl.BlockSpec((None, C, T), lambda n, i: (n, 0, i)),         # x row tile
                pl.BlockSpec((None, None, C, 2 * pad * W),
                             lambda n, i: (n, i, 0, 0)),                    # halo rows
                pl.BlockSpec((G, KKC), lambda n, i: (0, 0)),                # weights
                pl.BlockSpec((G, 1), lambda n, i: (0, 0)),                  # bias
            ],
            out_specs=pl.BlockSpec((None, C + G, T), lambda n, i: (n, 0, i)),
            scratch_shapes=[
                pltpu.VMEM((C, LW), dtype),
                pltpu.VMEM((KKC, T), pat_dtype),
            ],
        ),
        compiler_params=pltpu.CompilerParams(
            dimension_semantics=("parallel", "parallel"),
            vmem_limit_bytes=vmem_limit),
    )(w_idx, x_flat, halos, w_mat, b_col)

    out = out_flat.reshape(N, C + G, Hp, W)               # free reshape back to NCHW
    return out if Hp == H else out[:, :, :H, :]


def _reference(x_nchw, weight, bias, kernel_size):
    pad = kernel_size // 2
    y = jax.lax.conv_general_dilated(
        x_nchw, weight, window_strides=(1, 1),
        padding=((pad, pad), (pad, pad)),
        dimension_numbers=("NCHW", "OIHW", "NCHW"))
    y = jax.nn.relu(y + bias.reshape(1, -1, 1, 1))
    return jnp.concatenate((x_nchw, y), axis=1)


if __name__ == "__main__":
    # DenseBlock(channels=4, growth_rate=8, kernel_size=3)
    N, C, H, W = 2, 4, 16, 16
    G, K = 8, 3

    key = jax.random.PRNGKey(0)
    kx, kw_, kb = jax.random.split(key, 3)
    x = jax.random.normal(kx, (N, C, H, W), jnp.float32)
    fan_in = C * K * K
    weight = jax.random.normal(kw_, (G, C, K, K), jnp.float32) / jnp.sqrt(fan_in)
    bias = jax.random.normal(kb, (G,), jnp.float32) * 0.1

    fwd = jax.jit(lambda a, w, b: dense_block_forward(a, w, b, K))
    out = jax.block_until_ready(fwd(x, weight, bias))
    ref = _reference(x, weight, bias, K)
    assert out.shape == (N, C + G, H, W), out.shape
    assert jnp.allclose(out, ref, rtol=1e-4, atol=1e-5), "mismatch vs reference"

    # batch == 1 exercises the multi-row-tile + halo path (>= 2 grid steps for v7x).
    x1 = x[:1]
    out1 = jax.block_until_ready(
        jax.jit(lambda a, w, b: dense_block_forward(a, w, b, K))(x1, weight, bias))
    ref1 = _reference(x1, weight, bias, K)
    assert out1.shape == (1, C + G, H, W), out1.shape
    assert jnp.allclose(out1, ref1, rtol=1e-4, atol=1e-5), "mismatch (tiled path)"

    print("KERNEL_OK")
</pallas_src>

<mosaic_0001>
module attributes {stable_mosaic.version = 11 : i64} {
  func.func @kernel(%arg0: i32, %arg1: i32, %arg2: memref<1x256xi32, #tpu.memory_space<vmem>>, %arg3: memref<1x4x256xf32, #tpu.memory_space<vmem>>, %arg4: memref<1x1x4x32xf32, #tpu.memory_space<vmem>>, %arg5: memref<8x36xf32, #tpu.memory_space<vmem>>, %arg6: memref<8x1xf32, #tpu.memory_space<vmem>>, %arg7: memref<1x12x256xf32, #tpu.memory_space<vmem>>, %arg8: memref<4x290xf32, #tpu.memory_space<vmem>>, %arg9: memref<36x256xf32, #tpu.memory_space<vmem>>) attributes {dimension_semantics = [#tpu.dimension_semantics<parallel>, #tpu.dimension_semantics<parallel>], iteration_bounds = array<i64: 2, 1>, scalar_prefetch = 0 : i64, scratch_operands = 2 : i64, tpu.core_type = #tpu.core_type<tc>, window_params = [{pipeline_mode = #tpu.pipeline_mode<synchronous>, transform_indices = @transform_0, window_bounds = array<i64: 1, 256>}, {transform_indices = @transform_1, window_bounds = array<i64: 1, 4, 256>}, {transform_indices = @transform_2, window_bounds = array<i64: 1, 1, 4, 32>}, {pipeline_mode = #tpu.pipeline_mode<synchronous>, transform_indices = @transform_3, window_bounds = array<i64: 8, 36>}, {pipeline_mode = #tpu.pipeline_mode<synchronous>, transform_indices = @transform_4, window_bounds = array<i64: 8, 1>}, {transform_indices = @transform_5, window_bounds = array<i64: 1, 12, 256>}]} {
    %cst = arith.constant 0.000000e+00 : f32
    %0 = vector.broadcast %cst : f32 to vector<4x1xf32>
    %c0 = arith.constant 0 : index
    %c0_0 = arith.constant 0 : index
    %1 = vector.load %arg8[%c0, %c0_0] : memref<4x290xf32, #tpu.memory_space<vmem>>, vector<4x1xf32>
    tpu.vector_store %arg8[%c0, %c0_0], %0 {strides = array<i32>} : memref<4x290xf32, #tpu.memory_space<vmem>>, vector<4x1xf32>,
    %cst_1 = arith.constant 0.000000e+00 : f32
    %2 = vector.broadcast %cst_1 : f32 to vector<4x1xf32>
    %c0_2 = arith.constant 0 : index
    %c289 = arith.constant 289 : index
    %3 = vector.load %arg8[%c0_2, %c289] : memref<4x290xf32, #tpu.memory_space<vmem>>, vector<4x1xf32>
    tpu.vector_store %arg8[%c0_2, %c289], %2 {strides = array<i32>} : memref<4x290xf32, #tpu.memory_space<vmem>>, vector<4x1xf32>,
    %c0_3 = arith.constant 0 : index
    %c0_4 = arith.constant 0 : index
    %c0_5 = arith.constant 0 : index
    %c0_6 = arith.constant 0 : index
    %4 = vector.load %arg4[%c0_3, %c0_4, %c0_5, %c0_6] : memref<1x1x4x32xf32, #tpu.memory_space<vmem>>, vector<1x1x4x32xf32>
    %5 = vector.shape_cast %4 : vector<1x1x4x32xf32> to vector<4x32xf32>
    %6 = vector.extract_strided_slice %5 {offsets = [0, 0], sizes = [4, 16], strides = [1, 1]} : vector<4x32xf32> to vector<4x16xf32>
    %c0_7 = arith.constant 0 : index
    %c1 = arith.constant 1 : index
    %7 = vector.load %arg8[%c0_7, %c1] : memref<4x290xf32, #tpu.memory_space<vmem>>, vector<4x16xf32>
    tpu.vector_store %arg8[%c0_7, %c1], %6 {strides = array<i32>} : memref<4x290xf32, #tpu.memory_space<vmem>>, vector<4x16xf32>,
    %8 = vector.extract_strided_slice %5 {offsets = [0, 16], sizes = [4, 16], strides = [1, 1]} : vector<4x32xf32> to vector<4x16xf32>
    %c0_8 = arith.constant 0 : index
    %c273 = arith.constant 273 : index
    %9 = vector.load %arg8[%c0_8, %c273] : memref<4x290xf32, #tpu.memory_space<vmem>>, vector<4x16xf32>
    tpu.vector_store %arg8[%c0_8, %c273], %8 {strides = array<i32>} : memref<4x290xf32, #tpu.memory_space<vmem>>, vector<4x16xf32>,
    %c0_9 = arith.constant 0 : index
    %c0_10 = arith.constant 0 : index
    %c0_11 = arith.constant 0 : index
    %10 = vector.load %arg3[%c0_9, %c0_10, %c0_11] : memref<1x4x256xf32, #tpu.memory_space<vmem>>, vector<1x4x256xf32>
    %11 = vector.shape_cast %10 : vector<1x4x256xf32> to vector<4x256xf32>
    %c0_12 = arith.constant 0 : index
    %c17 = arith.constant 17 : index
    %12 = vector.load %arg8[%c0_12, %c17] : memref<4x290xf32, #tpu.memory_space<vmem>>, vector<4x256xf32>
    tpu.vector_store %arg8[%c0_12, %c17], %11 {strides = array<i32>} : memref<4x290xf32, #tpu.memory_space<vmem>>, vector<4x256xf32>,
    %c0_13 = arith.constant 0 : index
    %c0_14 = arith.constant 0 : index
    %13 = vector.load %arg2[%c0_13, %c0_14] : memref<1x256xi32, #tpu.memory_space<vmem>>, vector<1x256xi32>
    %c0_15 = arith.constant 0 : index
    %c0_16 = arith.constant 0 : index
    %14 = vector.load %arg8[%c0_15, %c0_16] : memref<4x290xf32, #tpu.memory_space<vmem>>, vector<4x256xf32>
    %c1_i32 = arith.constant 1 : i32
    %15 = vector.broadcast %c1_i32 : i32 to vector<1x256xi32>
    %16 = arith.cmpi sge, %13, %15 : vector<1x256xi32>
    %cst_17 = arith.constant 0.000000e+00 : f32
    %17 = vector.shape_cast %16 : vector<1x256xi1> to vector<1x256xi1>
    %18 = vector.broadcast %17 : vector<1x256xi1> to vector<4x256xi1>
    %19 = vector.broadcast %cst_17 : f32 to vector<4x256xf32>
    %20 = arith.select %18, %14, %19 : vector<4x256xi1>, vector<4x256xf32>
    %c0_18 = arith.constant 0 : index
    %c0_19 = arith.constant 0 : index
    %21 = vector.load %arg9[%c0_18, %c0_19] : memref<36x256xf32, #tpu.memory_space<vmem>>, vector<4x256xf32>
    tpu.vector_store %arg9[%c0_18, %c0_19], %20 {strides = array<i32>} : memref<36x256xf32, #tpu.memory_space<vmem>>, vector<4x256xf32>,
    %c0_20 = arith.constant 0 : index
    %c1_21 = arith.constant 1 : index
    %22 = vector.load %arg8[%c0_20, %c1_21] : memref<4x290xf32, #tpu.memory_space<vmem>>, vector<4x256xf32>
    %c4 = arith.constant 4 : index
    %c0_22 = arith.constant 0 : index
    %23 = vector.load %arg9[%c4, %c0_22] : memref<36x256xf32, #tpu.memory_space<vmem>>, vector<4x256xf32>
    tpu.vector_store %arg9[%c4, %c0_22], %22 {strides = array<i32>} : memref<36x256xf32, #tpu.memory_space<vmem>>, vector<4x256xf32>,
    %c0_23 = arith.constant 0 : index
    %c2 = arith.constant 2 : index
    %24 = vector.load %arg8[%c0_23, %c2] : memref<4x290xf32, #tpu.memory_space<vmem>>, vector<4x256xf32>
    %c15_i32 = arith.constant 15 : i32
    %25 = vector.broadcast %c15_i32 : i32 to vector<1x256xi32>
    %26 = arith.cmpi slt, %13, %25 : vector<1x256xi32>
    %cst_24 = arith.constant 0.000000e+00 : f32
    %27 = vector.shape_cast %26 : vector<1x256xi1> to vector<1x256xi1>
    %28 = vector.broadcast %27 : vector<1x256xi1> to vector<4x256xi1>
    %29 = vector.broadcast %cst_24 : f32 to vector<4x256xf32>
    %30 = arith.select %28, %24, %29 : vector<4x256xi1>, vector<4x256xf32>
    %c8 = arith.constant 8 : index
    %c0_25 = arith.constant 0 : index
    %31 = vector.load %arg9[%c8, %c0_25] : memref<36x256xf32, #tpu.memory_space<vmem>>, vector<4x256xf32>
    tpu.vector_store %arg9[%c8, %c0_25], %30 {strides = array<i32>} : memref<36x256xf32, #tpu.memory_space<vmem>>, vector<4x256xf32>,
    %c0_26 = arith.constant 0 : index
    %c16 = arith.constant 16 : index
    %32 = vector.load %arg8[%c0_26, %c16] : memref<4x290xf32, #tpu.memory_space<vmem>>, vector<4x256xf32>
    %c1_i32_27 = arith.constant 1 : i32
    %33 = vector.broadcast %c1_i32_27 : i32 to vector<1x256xi32>
    %34 = arith.cmpi sge, %13, %33 : vector<1x256xi32>
    %cst_28 = arith.constant 0.000000e+00 : f32
    %35 = vector.shape_cast %34 : vector<1x256xi1> to vector<1x256xi1>
    %36 = vector.broadcast %35 : vector<1x256xi1> to vector<4x256xi1>
    %37 = vector.broadcast %cst_28 : f32 to vector<4x256xf32>
    %38 = arith.select %36, %32, %37 : vector<4x256xi1>, vector<4x256xf32>
    %c12 = arith.constant 12 : index
    %c0_29 = arith.constant 0 : index
    %39 = vector.load %arg9[%c12, %c0_29] : memref<36x256xf32, #tpu.memory_space<vmem>>, vector<4x256xf32>
    tpu.vector_store %arg9[%c12, %c0_29], %38 {strides = array<i32>} : memref<36x256xf32, #tpu.memory_space<vmem>>, vector<4x256xf32>,
    %c0_30 = arith.constant 0 : index
    %c17_31 = arith.constant 17 : index
    %40 = vector.load %arg8[%c0_30, %c17_31] : memref<4x290xf32, #tpu.memory_space<vmem>>, vector<4x256xf32>
    %c16_32 = arith.constant 16 : index
    %c0_33 = arith.constant 0 : index
    %41 = vector.load %arg9[%c16_32, %c0_33] : memref<36x256xf32, #tpu.memory_space<vmem>>, vector<4x256xf32>
    tpu.vector_store %arg9[%c16_32, %c0_33], %40 {strides = array<i32>} : memref<36x256xf32, #tpu.memory_space<vmem>>, vector<4x256xf32>,
    %c0_34 = arith.constant 0 : index
    %c18 = arith.constant 18 : index
    %42 = vector.load %arg8[%c0_34, %c18] : memref<4x290xf32, #tpu.memory_space<vmem>>, vector<4x256xf32>
    %c15_i32_35 = arith.constant 15 : i32
    %43 = vector.broadcast %c15_i32_35 : i32 to vector<1x256xi32>
    %44 = arith.cmpi slt, %13, %43 : vector<1x256xi32>
    %cst_36 = arith.constant 0.000000e+00 : f32
    %45 = vector.shape_cast %44 : vector<1x256xi1> to vector<1x256xi1>
    %46 = vector.broadcast %45 : vector<1x256xi1> to vector<4x256xi1>
    %47 = vector.broadcast %cst_36 : f32 to vector<4x256xf32>
    %48 = arith.select %46, %42, %47 : vector<4x256xi1>, vector<4x256xf32>
    %c20 = arith.constant 20 : index
    %c0_37 = arith.constant 0 : index
    %49 = vector.load %arg9[%c20, %c0_37] : memref<36x256xf32, #tpu.memory_space<vmem>>, vector<4x256xf32>
    tpu.vector_store %arg9[%c20, %c0_37], %48 {strides = array<i32>} : memref<36x256xf32, #tpu.memory_space<vmem>>, vector<4x256xf32>,
    %c0_38 = arith.constant 0 : index
    %c32 = arith.constant 32 : index
    %50 = vector.load %arg8[%c0_38, %c32] : memref<4x290xf32, #tpu.memory_space<vmem>>, vector<4x256xf32>
    %c1_i32_39 = arith.constant 1 : i32
    %51 = vector.broadcast %c1_i32_39 : i32 to vector<1x256xi32>
    %52 = arith.cmpi sge, %13, %51 : vector<1x256xi32>
    %cst_40 = arith.constant 0.000000e+00 : f32
    %53 = vector.shape_cast %52 : vector<1x256xi1> to vector<1x256xi1>
    %54 = vector.broadcast %53 : vector<1x256xi1> to vector<4x256xi1>
    %55 = vector.broadcast %cst_40 : f32 to vector<4x256xf32>
    %56 = arith.select %54, %50, %55 : vector<4x256xi1>, vector<4x256xf32>
    %c24 = arith.constant 24 : index
    %c0_41 = arith.constant 0 : index
    %57 = vector.load %arg9[%c24, %c0_41] : memref<36x256xf32, #tpu.memory_space<vmem>>, vector<4x256xf32>
    tpu.vector_store %arg9[%c24, %c0_41], %56 {strides = array<i32>} : memref<36x256xf32, #tpu.memory_space<vmem>>, vector<4x256xf32>,
    %c0_42 = arith.constant 0 : index
    %c33 = arith.constant 33 : index
    %58 = vector.load %arg8[%c0_42, %c33] : memref<4x290xf32, #tpu.memory_space<vmem>>, vector<4x256xf32>
    %c28 = arith.constant 28 : index
    %c0_43 = arith.constant 0 : index
    %59 = vector.load %arg9[%c28, %c0_43] : memref<36x256xf32, #tpu.memory_space<vmem>>, vector<4x256xf32>
    tpu.vector_store %arg9[%c28, %c0_43], %58 {strides = array<i32>} : memref<36x256xf32, #tpu.memory_space<vmem>>, vector<4x256xf32>,
    %c0_44 = arith.constant 0 : index
    %c34 = arith.constant 34 : index
    %60 = vector.load %arg8[%c0_44, %c34] : memref<4x290xf32, #tpu.memory_space<vmem>>, vector<4x256xf32>
    %c15_i32_45 = arith.constant 15 : i32
    %61 = vector.broadcast %c15_i32_45 : i32 to vector<1x256xi32>
    %62 = arith.cmpi slt, %13, %61 : vector<1x256xi32>
    %cst_46 = arith.constant 0.000000e+00 : f32
    %63 = vector.shape_cast %62 : vector<1x256xi1> to vector<1x256xi1>
    %64 = vector.broadcast %63 : vector<1x256xi1> to vector<4x256xi1>
    %65 = vector.broadcast %cst_46 : f32 to vector<4x256xf32>
    %66 = arith.select %64, %60, %65 : vector<4x256xi1>, vector<4x256xf32>
    %c32_47 = arith.constant 32 : index
    %c0_48 = arith.constant 0 : index
    %67 = vector.load %arg9[%c32_47, %c0_48] : memref<36x256xf32, #tpu.memory_space<vmem>>, vector<4x256xf32>
    tpu.vector_store %arg9[%c32_47, %c0_48], %66 {strides = array<i32>} : memref<36x256xf32, #tpu.memory_space<vmem>>, vector<4x256xf32>,
    %c0_49 = arith.constant 0 : index
    %c0_50 = arith.constant 0 : index
    %68 = vector.load %arg5[%c0_49, %c0_50] : memref<8x36xf32, #tpu.memory_space<vmem>>, vector<8x36xf32>
    %c0_51 = arith.constant 0 : index
    %c0_52 = arith.constant 0 : index
    %69 = vector.load %arg9[%c0_51, %c0_52] : memref<36x256xf32, #tpu.memory_space<vmem>>, vector<36x256xf32>
    %cst_53 = arith.constant dense<0.000000e+00> : vector<8x256xf32>
    %70 = tpu.matmul %68, %69, %cst_53 {dimension_numbers = #tpu.dot_dimension_numbers<[1], [0], [0], [1], [0, 0, 1, 1], [], []>} : vector<8x36xf32>, vector<36x256xf32>, vector<8x256xf32> -> vector<8x256xf32>
    %c0_54 = arith.constant 0 : index
    %c0_55 = arith.constant 0 : index
    %71 = vector.load %arg6[%c0_54, %c0_55] : memref<8x1xf32, #tpu.memory_space<vmem>>, vector<8x1xf32>
    %72 = vector.broadcast %71 : vector<8x1xf32> to vector<8x256xf32>
    %73 = arith.addf %70, %72 : vector<8x256xf32>
    %cst_56 = arith.constant 0.000000e+00 : f32
    %74 = vector.broadcast %cst_56 : f32 to vector<8x256xf32>
    %75 = arith.maximumf %73, %74 : vector<8x256xf32>
    %c0_57 = arith.constant 0 : index
    %c0_58 = arith.constant 0 : index
    %c0_59 = arith.constant 0 : index
    %76 = vector.load %arg3[%c0_57, %c0_58, %c0_59] : memref<1x4x256xf32, #tpu.memory_space<vmem>>, vector<1x4x256xf32>
    %77 = vector.shape_cast %76 : vector<1x4x256xf32> to vector<4x256xf32>
    %c0_60 = arith.constant 0 : index
    %c0_61 = arith.constant 0 : index
    %c0_62 = arith.constant 0 : index
    %78 = vector.load %arg7[%c0_60, %c0_61, %c0_62] : memref<1x12x256xf32, #tpu.memory_space<vmem>>, vector<1x4x256xf32>
    %79 = vector.shape_cast %78 : vector<1x4x256xf32> to vector<4x256xf32>
    %80 = vector.shape_cast %77 : vector<4x256xf32> to vector<1x4x256xf32>
    tpu.vector_store %arg7[%c0_60, %c0_61, %c0_62], %80 {strides = array<i32>} : memref<1x12x256xf32, #tpu.memory_space<vmem>>, vector<1x4x256xf32>,
    %c0_63 = arith.constant 0 : index
    %c4_64 = arith.constant 4 : index
    %c0_65 = arith.constant 0 : index
    %81 = vector.load %arg7[%c0_63, %c4_64, %c0_65] : memref<1x12x256xf32, #tpu.memory_space<vmem>>, vector<1x8x256xf32>
    %82 = vector.shape_cast %81 : vector<1x8x256xf32> to vector<8x256xf32>
    %83 = vector.shape_cast %75 : vector<8x256xf32> to vector<1x8x256xf32>
    tpu.vector_store %arg7[%c0_63, %c4_64, %c0_65], %83 {strides = array<i32>} : memref<1x12x256xf32, #tpu.memory_space<vmem>>, vector<1x8x256xf32>,
    return
  }
  func.func @transform_0(%arg0: i32, %arg1: i32) -> (i32, i32) {
    %c0_i32 = arith.constant 0 : i32
    %c0_i32_0 = arith.constant 0 : i32
    %c0_i32_1 = arith.constant 0 : i32
    return %c0_i32, %c0_i32_0 : i32, i32
  }
  func.func @transform_1(%arg0: i32, %arg1: i32) -> (i32, i32, i32) {
    %c0_i32 = arith.constant 0 : i32
    %c0_i32_0 = arith.constant 0 : i32
    return %arg0, %c0_i32, %arg1 : i32, i32, i32
  }
  func.func @transform_2(%arg0: i32, %arg1: i32) -> (i32, i32, i32, i32) {
    %c0_i32 = arith.constant 0 : i32
    %c0_i32_0 = arith.constant 0 : i32
    %c0_i32_1 = arith.constant 0 : i32
    return %arg0, %arg1, %c0_i32, %c0_i32_0 : i32, i32, i32, i32
  }
  func.func @transform_3(%arg0: i32, %arg1: i32) -> (i32, i32) {
    %c0_i32 = arith.constant 0 : i32
    %c0_i32_0 = arith.constant 0 : i32
    %c0_i32_1 = arith.constant 0 : i32
    return %c0_i32, %c0_i32_0 : i32, i32
  }
  func.func @transform_4(%arg0: i32, %arg1: i32) -> (i32, i32) {
    %c0_i32 = arith.constant 0 : i32
    %c0_i32_0 = arith.constant 0 : i32
    %c0_i32_1 = arith.constant 0 : i32
    return %c0_i32, %c0_i32_0 : i32, i32
  }
  func.func @transform_5(%arg0: i32, %arg1: i32) -> (i32, i32, i32) {
    %c0_i32 = arith.constant 0 : i32
    %c0_i32_0 = arith.constant 0 : i32
    return %arg0, %c0_i32, %arg1 : i32, i32, i32
  }
}

</mosaic_0001>

<bundles_post_ra>
// kernel: _lambda_.1
= control target key start
LH: loop header
LB: loop body
LE: loop exit
PB: predicated region body
PF: predicated region fallthrough
CT: control target
= control target key end

     0   :  { %s865_s18 = smov 0   ;;  %s867_s19 = smov 0   ;;  %s1009_s0 = inlined_call_operand.vmem [shape: s32[1,256], index: 0, kind: input, shape index: {}]   ;;  %s1010_s1 = inlined_call_operand.vmem [shape: f32[2,4,256], index: 1, kind: input, shape index: {}]   ;;  %s1011_s2 = inlined_call_operand.vmem [shape: f32[2,1,4,32], index: 2, kind: input, shape index: {}]   ;;  %s1012_s3 = inlined_call_operand.vmem [shape: f32[8,36], index: 3, kind: input, shape index: {}]   ;;  %s1013_s4 = inlined_call_operand.vmem [shape: f32[8,1], index: 4, kind: input, shape index: {}]   ;;  %s1014_s5 = inlined_call_operand.vmem [shape: f32[2,12,256], index: 5, kind: output, shape index: {}]  }
   0x1   :  { %s869_s20 = smov 0  }
   0x2 LB: > { %s27_s21 = sadd.s32 1, %s817_s19  ;;  %p747_p0 = scmp.ge.s32.totalorder %s821_s20, 1  ;;  %s821_s20 = sphi %s869_s20, %s15_s20   ;;  %s817_s19 = sphi %s867_s19, %s1024_s19   ;;  %s813_s18 = sphi %s865_s18, %s1023_s18  }
   0x3   : > { %p29_p1 = scmp.ge.s32.totalorder %s27_s21, 2  ;;  %p222_p2 = scmp.lt.s32.totalorder %s821_s20, 3 }
   0x5   : > { %s1026_s21 = smov (%p29_p1, %s27_s21), 0  ;;  %p223_p3 = pnand %p747_p0, %p222_p2 }
   0x6   : > { %p266_p4 = scmp.lt.s32.totalorder (!%p223_p3), %s813_s18, 1  ;;  %s823_s27 = smov (!%p223_p3), 17  }
   0x7   : > { %226 = sbr.rel (%p223_p3) target bundleno = 504 (0x1f8), region = 40  ;;  %s824_s6 = smov (!%p223_p3), 1  }
   0x8   : > { %s827_s9 = smov (!%p223_p3), 126   ;;  %s828_s10 = smov (!%p223_p3), 112  }
   0x9   : > { %s829_s11 = smov (!%p223_p3), 111   ;;  %s830_s12 = smov (!%p223_p3), 110  }
   0xa   : > { %s831_s13 = smov (!%p223_p3), 96   ;;  %s832_s14 = smov (!%p223_p3), 95  }
   0xb   : > { %s833_s15 = smov (!%p223_p3), 94   ;;  %s834_s16 = smov (!%p223_p3), 127  }
   0xc   : > { %s1028_s18 = smov (!%p266_p4, %s813_s18), 1  ;;  %vm292_vm0 = vcmask 3072   ;;  %vm294_vm1 = vcmask 273672   ;;  %v825_v2 = vmov 0.0   ;;  %v826_v3 = vmov 0   ;;  %v563_v14 = vld [vmem:[%s1013_s4] sm:$0xff] }
   0xd   : > { %s759_s22 = sshll.u32 %s1028_s18, 3  ;;  %s750_s26 = sshll.u32 %s1028_s18, 2  ;;  %293 = vst.msk [vmem:[#allocation2] sm:$0xf] %vm292_vm0, %v825_v2  ;;  %797 = vset.pattern.permute.xlu2 %v826_v3  ;;  %798 = vset.pattern.permute.xlu0 %v826_v3  ;;  %vm314_vm2 = vcmask 1043592   ;;  %vm315_vm3 = vcmask 1047556  }
   0xe   : > { %s273_s25 = scalar_lea.vmem %s1010_s1, %s759_s22  ;;  %s281_s30 = scalar_lea.vmem %s1011_s2, %s750_s26  ;;  %295 = vst.msk [vmem:[#allocation2 + $0x8] sm:$0xf] %vm294_vm1, %v825_v2  ;;  %vm301_vm4 = vcmask 134152   ;;  %vm310_vm5 = vcmask 138240   ;;  %vm303_vm6 = vcmask 265352   ;;  %vm316_vm7 = vmor %vm315_vm3, %vm314_vm2  ;;  %vm318_vm8 = vcmask 134144  }
   0xf   : > { %v889_v0 = vld [vmem:[%s273_s25] sm:$0xff]  ;;  %s760_s17 = sshll.u32 %s1028_s18, 5  ;;  %vm384_vm13 = vcmask 1031168   ;;  %vm409_vm15 = vcmask 916480   ;;  %vm440_vm0 = vcmask 908288   ;;  %vm463_vm1 = vcmask 900096  }
  0x10   : > { %307 = vrot.lane.b32.xlu0 %v889_v0, %s823_s27  ;;  %v296_v1 = vld [vmem:[%s281_s30] sm:$0xf]  ;;  %s944_s24 = scalar_lea.vmem %s1014_s5, %s760_s17  ;;  %vm494_vm3 = vcmask 785408  }
  0x11   : > { %v901_v8 = vld [vmem:[%s1009_s0] sm:$0x3] }
  0x12   : > { %vm322_vm9 = vcmp.ge.s32.totalorder %v901_v8, 1  ;;  %vm364_vm12 = vcmp.lt.s32.totalorder %v901_v8, 15 }
  0x13   : > { %v323_v9 = vsel %vm322_vm9, 1, %v826_v3  ;;  %v365_v55 = vsel %vm364_vm12, 1, %v826_v3 }
  0x14   : > { %v325_v12 = vperm.slane %v323_v9, 1  ;;  %v324_v13 = vperm.slane %v323_v9, 0  ;;  %v366_v56 = vperm.slane %v365_v55, 0 }
  0x16   : > { %vm908_vm10 = vcmp.eq.s32.totalorder %v325_v12, 1  ;;  %vm912_vm11 = vcmp.eq.s32.totalorder %v324_v13, 1  ;;  %vm954_vm14 = vcmp.eq.s32.totalorder %v366_v56, 1  ;;  %v367_v12 = vperm.slane %v365_v55, 1  ;;  %v552_v56 = vld [vmem:[%s1012_s3] sm:$0xff] }
  0x18   : > { %298 = vrot.lane.b32.xlu0 %v296_v1, %s824_s6  ;;  %vm968_vm2 = vcmp.eq.s32.totalorder %v367_v12, 1 }
  0x82   : > { %v308_v4 = vpop.permute.xlu0 %307 }
  0x83   : > { %v309_v5 = vrot.slane %v308_v4, 4 }
  0x85   : > { %v311_v7 = vsel %vm310_vm5, %v309_v5, %v308_v4  ;;  %vm355_vm5 = vcmask 1039360  }
  0x8a   : > { %v299_v6 = vpop.permute.xlu0 %298 }
  0x8b   : > { %302 = vst.msk [vmem:[#allocation2] sm:$0xf] %vm301_vm4, %v299_v6  ;;  %vm520_vm4 = vcmask 777216  }
  0x8c   : > { %304 = vst.msk [vmem:[#allocation2 + $0x8] sm:$0xf] %vm303_vm6, %v299_v6  ;;  %vm543_vm6 = vcmask 769024  }
  0x8d   : > { %317 = vst.msk [vmem:[#allocation2] sm:$0xff] %vm316_vm7, %v311_v7  ;;  %vm573_vm7 = vcmask 1043456  }
  0x8e   : > { %319 = vst.msk [vmem:[#allocation2 + $0x8] sm:$0xf] %vm318_vm8, %v309_v5  ;;  %vm569_vm8 = vcmask 293888  }
  0x94   : > { %v905_v10 = vld [vmem:[#allocation2] sm:$0xff] }
  0x95   : > { %329 = vst [vmem:[#allocation1] ss:$2 sm:$0xff] %v905_v10  ;;  %v339_v11 = vld [vmem:[#allocation2 + $0x8] sm:$0xf] }
  0x96   : > { %345 = vst [vmem:[#allocation1 + $0x11] ss:$2 sm:$0xff] %v339_v11  ;;  %v363_v15 = vld [vmem:[#allocation2 + $0x8] sm:$0xf] }
  0x97   : > { %v394_v22 = vld [vmem:[#allocation2 + $0x8] sm:$0xf] }
  0x98   : > { %v425_v26 = vld [vmem:[#allocation2 + $0x8] sm:$0xf] }
  0x99   : > { %v448_v30 = vld [vmem:[#allocation2 + $0x8] sm:$0xf] }
  0x9a   : > { %v479_v34 = vld [vmem:[#allocation2 + $0x8] sm:$0xf] }
  0x9b   : > { %v504_v38 = vld [vmem:[#allocation2 + $0x8] sm:$0xf] }
  0x9c   : > { %v330_v17 = vld.sshfl [vmem:[#allocation1] sm:$0xff pattern:$0x75316420]  ;;  %v331_v18 = vld.sshfl [vmem:[#allocation1 + $0x8] sm:$0xff pattern:$0x75316420] }
  0x9d   : > { %343 = vst [vmem:[#allocation1 + $0x1] ss:$2 sm:$0xff] %v905_v10  ;;  %v917_v19 = vld.sshfl [vmem:[#allocation1 + $0x10] sm:$0xff pattern:$0x75316420]  ;;  %v335_v20 = vsel %vm908_vm10, %v331_v18, 0.0 }
  0x9e   : > { %374 = vst [vmem:[#allocation1 + $0x10] ss:$2 sm:$0xff] %v363_v15  ;;  %v334_v21 = vsel %vm912_vm11, %v330_v17, 0.0  ;;  %v528_v42 = vld [vmem:[#allocation2 + $0x8] sm:$0xf] }
  0x9f   : > { %337 = vst [vmem:[#allocation3] sm:$0xf] %v335_v20 }
  0xa0   : > { %336 = vst [vmem:[#allocation3 + $0x30] sm:$0xf] %v334_v21 }
  0xa4   : > { %v923_v23 = vld.sshfl [vmem:[#allocation1] sm:$0xff pattern:$0x75316420]  ;;  %v925_v24 = vld.sshfl [vmem:[#allocation1 + $0x8] sm:$0xff pattern:$0x75316420] }
  0xa5   : > { %372 = vst [vmem:[#allocation1] ss:$2 sm:$0xff] %v905_v10  ;;  %v928_v25 = vld.sshfl [vmem:[#allocation1 + $0x10] sm:$0xff pattern:$0x75316420] }
  0xa6   : > { %399 = vst [vmem:[#allocation1 + $0x10] ss:$2 sm:$0xff] %v394_v22 }
  0xac   : > { %v376_v27 = vld.sshfl [vmem:[#allocation1 + $0x8] sm:$0xff pattern:$0x75316420]  ;;  %v375_v28 = vld.sshfl [vmem:[#allocation1] sm:$0xff pattern:$0x75316420] }
  0xad   : > { %v402_v29 = vld.sshfl [vmem:[#allocation1 + $0x10] sm:$0xff pattern:$0x75316420]  ;;  %380 = vrot.lane.b32.xlu0 %v376_v27, %s827_s9  ;;  %378 = vrot.lane.b32.xlu2 %v375_v28, %s827_s9  ;;  %397 = vst [vmem:[#allocation1] ss:$2 sm:$0xff] %v905_v10 }
  0xae   : > { %407 = vrot.lane.b32.xlu1 %v402_v29, %s828_s10  ;;  %430 = vst [vmem:[#allocation1 + $0x10] ss:$2 sm:$0xff] %v425_v26 }
  0xb4   : > { %v401_v31 = vld.sshfl [vmem:[#allocation1 + $0x8] sm:$0xff pattern:$0x75316420]  ;;  %v400_v32 = vld.sshfl [vmem:[#allocation1] sm:$0xff pattern:$0x75316420] }
  0xb5   : > { %v433_v33 = vld.sshfl [vmem:[#allocation1 + $0x10] sm:$0xff pattern:$0x75316420]  ;;  %405 = vrot.lane.b32.xlu0 %v401_v31, %s828_s10  ;;  %403 = vrot.lane.b32.xlu2 %v400_v32, %s828_s10  ;;  %428 = vst [vmem:[#allocation1] ss:$2 sm:$0xff] %v905_v10 }
  0xb6   : > { %438 = vrot.lane.b32.xlu1 %v433_v33, %s829_s11  ;;  %453 = vst [vmem:[#allocation1 + $0x10] ss:$2 sm:$0xff] %v448_v30 }
  0xbc   : > { %v432_v35 = vld.sshfl [vmem:[#allocation1 + $0x8] sm:$0xff pattern:$0x75316420]  ;;  %v431_v36 = vld.sshfl [vmem:[#allocation1] sm:$0xff pattern:$0x75316420] }
  0xbd   : > { %v456_v37 = vld.sshfl [vmem:[#allocation1 + $0x10] sm:$0xff pattern:$0x75316420]  ;;  %436 = vrot.lane.b32.xlu0 %v432_v35, %s829_s11  ;;  %434 = vrot.lane.b32.xlu2 %v431_v36, %s829_s11  ;;  %451 = vst [vmem:[#allocation1] ss:$2 sm:$0xff] %v905_v10 }
  0xbe   : > { %461 = vrot.lane.b32.xlu1 %v456_v37, %s830_s12  ;;  %484 = vst [vmem:[#allocation1 + $0x10] ss:$2 sm:$0xff] %v479_v34 }
  0xc4   : > { %v455_v39 = vld.sshfl [vmem:[#allocation1 + $0x8] sm:$0xff pattern:$0x75316420]  ;;  %v454_v40 = vld.sshfl [vmem:[#allocation1] sm:$0xff pattern:$0x75316420] }
  0xc5   : > { %v487_v41 = vld.sshfl [vmem:[#allocation1 + $0x10] sm:$0xff pattern:$0x75316420]  ;;  %459 = vrot.lane.b32.xlu0 %v455_v39, %s830_s12  ;;  %457 = vrot.lane.b32.xlu2 %v454_v40, %s830_s12  ;;  %482 = vst [vmem:[#allocation1] ss:$2 sm:$0xff] %v905_v10 }
  0xc6   : > { %492 = vrot.lane.b32.xlu1 %v487_v41, %s831_s13  ;;  %510 = vst [vmem:[#allocation1 + $0x11] ss:$2 sm:$0xff] %v504_v38 }
  0xcc   : > { %v486_v43 = vld.sshfl [vmem:[#allocation1 + $0x8] sm:$0xff pattern:$0x75316420]  ;;  %v485_v44 = vld.sshfl [vmem:[#allocation1] sm:$0xff pattern:$0x75316420] }
  0xcd   : > { %v513_v45 = vld.sshfl [vmem:[#allocation1 + $0x10] sm:$0xff pattern:$0x75316420]  ;;  %490 = vrot.lane.b32.xlu0 %v486_v43, %s831_s13  ;;  %488 = vrot.lane.b32.xlu2 %v485_v44, %s831_s13  ;;  %508 = vst [vmem:[#allocation1 + $0x1] ss:$2 sm:$0xff] %v905_v10 }
  0xce   : > { %518 = vrot.lane.b32.xlu1 %v513_v45, %s832_s14  ;;  %533 = vst [vmem:[#allocation1 + $0x10] ss:$2 sm:$0xff] %v528_v42 }
  0xd4   : > { %v512_v46 = vld.sshfl [vmem:[#allocation1 + $0x8] sm:$0xff pattern:$0x75316420]  ;;  %v511_v47 = vld.sshfl [vmem:[#allocation1] sm:$0xff pattern:$0x75316420] }
  0xd5   : > { %v536_v48 = vld.sshfl [vmem:[#allocation1 + $0x10] sm:$0xff pattern:$0x75316420]  ;;  %516 = vrot.lane.b32.xlu0 %v512_v46, %s832_s14  ;;  %531 = vst [vmem:[#allocation1] ss:$2 sm:$0xff] %v905_v10 }
  0xd6   : > { %541 = vrot.lane.b32.xlu2 %v536_v48, %s833_s15 }
  0xdc   : > { %v534_v49 = vld.sshfl [vmem:[#allocation1] sm:$0xff pattern:$0x75316420]  ;;  %v535_v50 = vld.sshfl [vmem:[#allocation1 + $0x8] sm:$0xff pattern:$0x75316420] }
  0xdd   : > { %351 = vrot.lane.b32.xlu0 %v925_v24, %s834_s16  ;;  %537 = vrot.lane.b32.xlu1 %v534_v49, %s833_s15  ;;  %624 = vst [vmem:[#allocation1] ss:$2 sm:$0xff] %v889_v0 }
  0xde   : > { %514 = vrot.lane.b32.xlu2 %v511_v47, %s832_s14 }
  0xe4   : > { %v625_v51 = vld.sshfl [vmem:[#allocation1] sm:$0xff pattern:$0x75316420]  ;;  %v626_v52 = vld.sshfl [vmem:[#allocation1 + $0x8] sm:$0xff pattern:$0x75316420] }
  0xe5   : > { %539 = vrot.lane.b32.xlu1 %v535_v50, %s833_s15  ;;  %629 = vst [vmem:[%s944_s24] sm:$0xf] %v625_v51 }
  0xe6   : > { %349 = vrot.lane.b32.xlu2 %v923_v23, %s834_s16  ;;  %630 = vst [vmem:[%s944_s24 + $0x8] sm:$0xf] %v626_v52 }
  0xed   : > { %382 = vrot.lane.b32.xlu1 %v928_v25, %s827_s9 }
  0xee   : > { %566 = vperm.xlu2 %797, %v563_v14  }
  0xf5   : > { %353 = vrot.lane.b32.xlu1 %v917_v19, %s834_s16 }
 0x107   : > { %v379_v53 = vpop.permute.xlu2 %378 }
 0x10f   : > { %v404_v54 = vpop.permute.xlu2 %403 }
 0x117   : > { %v435_v57 = vpop.permute.xlu2 %434 }
 0x11f   : > { %v958_v59 = vpop.permute.xlu0 %380  ;;  %v458_v63 = vpop.permute.xlu2 %457 }
 0x120   : > { %v408_v60 = vpop.permute.xlu1 %407  ;;  %v385_v61 = vsel %vm384_vm13, %v379_v53, %v958_v59 }
 0x121   : > { %v389_v62 = vsel %vm954_vm14, %v385_v61, 0.0 }
 0x122   : > { %391 = vst [vmem:[#allocation3 + $0x18] sm:$0xf] %v389_v62 }
 0x127   : > { %v406_v0 = vpop.permute.xlu0 %405  ;;  %v489_v9 = vpop.permute.xlu2 %488 }
 0x128   : > { %v410_v1 = vsel %vm409_vm15, %v404_v54, %v406_v0  ;;  %v411_v2 = vsel %vm409_vm15, %v406_v0, %v408_v60  ;;  %v439_v3 = vpop.permute.xlu1 %438 }
 0x129   : > { %v414_v4 = vsel %vm912_vm11, %v410_v1, 0.0  ;;  %v415_v5 = vsel %vm908_vm10, %v411_v2, 0.0 }
 0x12a   : > { %v418_v6 = vrot.slane %v414_v4, 4  ;;  %v419_v7 = vrot.slane %v415_v5, 4 }
 0x12c   : > { %422 = vst [vmem:[#allocation3 + $0x18] sm:$0xf0] %v418_v6 }
 0x12d   : > { %423 = vst [vmem:[#allocation3 + $0x10] sm:$0xf0] %v419_v7 }
 0x12f   : > { %v437_v8 = vpop.permute.xlu0 %436 }
 0x130   : > { %v441_v10 = vsel %vm440_vm0, %v435_v57, %v437_v8  ;;  %v442_v11 = vsel %vm440_vm0, %v437_v8, %v439_v3  ;;  %v462_v13 = vpop.permute.xlu1 %461  ;;  %v542_v22 = vpop.permute.xlu2 %541 }
 0x131   : > { %445 = vst [vmem:[#allocation3 + $0x48] sm:$0xf] %v441_v10 }
 0x132   : > { %446 = vst [vmem:[#allocation3 + $0x28] sm:$0xf] %v442_v11 }
 0x133   : > { %v555_v54 = vld [vmem:[#allocation3 + $0x18] sm:$0xff] }
 0x137   : > { %v460_v17 = vpop.permute.xlu0 %459 }
 0x138   : > { %v464_v18 = vsel %vm463_vm1, %v458_v63, %v460_v17  ;;  %v465_v19 = vsel %vm463_vm1, %v460_v17, %v462_v13  ;;  %v493_v25 = vpop.permute.xlu1 %492  ;;  %v515_v31 = vpop.permute.xlu2 %514 }
 0x139   : > { %v468_v20 = vsel %vm954_vm14, %v464_v18, 0.0  ;;  %v469_v21 = vsel %vm968_vm2, %v465_v19, 0.0 }
 0x13a   : > { %v472_v23 = vrot.slane %v468_v20, 4  ;;  %v473_v24 = vrot.slane %v469_v21, 4 }
 0x13c   : > { %476 = vst [vmem:[#allocation3 + $0x48] sm:$0xf0] %v472_v23 }
 0x13d   : > { %477 = vst [vmem:[#allocation3 + $0x28] sm:$0xf0] %v473_v24 }
 0x13f   : > { %v491_v26 = vpop.permute.xlu0 %490 }
 0x140   : > { %v495_v27 = vsel %vm494_vm3, %v489_v9, %v491_v26  ;;  %v496_v28 = vsel %vm494_vm3, %v491_v26, %v493_v25  ;;  %v519_v32 = vpop.permute.xlu1 %518  ;;  %v350_v36 = vpop.permute.xlu2 %349 }
 0x141   : > { %v499_v29 = vsel %vm912_vm11, %v495_v27, 0.0  ;;  %v500_v30 = vsel %vm908_vm10, %v496_v28, 0.0 }
 0x142   : > { %501 = vst [vmem:[#allocation3 + $0x8] sm:$0xf] %v499_v29 }
 0x143   : > { %502 = vst [vmem:[#allocation3 + $0x20] sm:$0xf] %v500_v30  ;;  %v557_v51 = vld [vmem:[#allocation3 + $0x48] sm:$0xff] }
 0x144   : > { %v558_v52 = vld [vmem:[#allocation3 + $0x28] sm:$0xff] }
 0x147   : > { %v517_v33 = vpop.permute.xlu0 %516 }
 0x148   : > { %v521_v34 = vsel %vm520_vm4, %v515_v31, %v517_v33  ;;  %v522_v35 = vsel %vm520_vm4, %v517_v33, %v519_v32  ;;  %v567_v60 = vpop.permute.xlu2 %566 }
 0x149   : > { %525 = vst [vmem:[#allocation3 + $0x8] sm:$0xf0] %v521_v34 }
 0x14a   : > { %526 = vst [vmem:[#allocation3 + $0x20] sm:$0xf0] %v522_v35 }
 0x14f   : > { %v352_v37 = vpop.permute.xlu0 %351  ;;  %v538_v38 = vpop.permute.xlu1 %537 }
 0x150   : > { %v356_v16 = vsel %vm355_vm5, %v350_v36, %v352_v37  ;;  %v559_v49 = vld [vmem:[#allocation3 + $0x8] sm:$0xff] }
 0x151   : > { %360 = vst [vmem:[#allocation3 + $0x30] sm:$0xf0] %v356_v16  ;;  %v560_v50 = vld [vmem:[#allocation3 + $0x20] sm:$0xff] }
 0x157   : > { %v540_v39 = vpop.permute.xlu1 %539 }
 0x158   : > { %v544_v40 = vsel %vm543_vm6, %v538_v38, %v540_v39  ;;  %v545_v41 = vsel %vm543_vm6, %v540_v39, %v542_v22  ;;  %v553_v57 = vld [vmem:[#allocation3 + $0x30] sm:$0xff] }
 0x159   : > { %v548_v42 = vsel %vm954_vm14, %v544_v40, 0.0  ;;  %v549_v43 = vsel %vm968_vm2, %v545_v41, 0.0 }
 0x15a   : > { %550 = vst [vmem:[#allocation3 + $0x40] sm:$0xf] %v548_v42 }
 0x15b   : > { %551 = vst [vmem:[#allocation3 + $0x38] sm:$0xf] %v549_v43 }
 0x15f   : > { %v383_v44 = vpop.permute.xlu1 %382 }
 0x160   : > { %v386_v45 = vsel %vm384_vm13, %v958_v59, %v383_v44 }
 0x161   : > { %v390_v46 = vsel %vm968_vm2, %v386_v45, 0.0  ;;  %v561_v47 = vld [vmem:[#allocation3 + $0x40] sm:$0xf] }
 0x162   : > { %392 = vst [vmem:[#allocation3 + $0x10] sm:$0xf] %v390_v46  ;;  %753 = vmatpush.msk.msra.mxu0 %vm573_vm7, %v561_v47  ;;  %v562_v48 = vld [vmem:[#allocation3 + $0x38] sm:$0xf] }
 0x163   : > { %755 = vmatpush.msk.msra.mxu1 %vm573_vm7, %v562_v48 }
 0x164   : > { %592 = vmatpush.msra.mxu0 %v559_v49 }
 0x165   : > { %612 = vmatpush.msra.mxu1 %v560_v50 }
 0x166   : > { %593 = vmatpush.msra.mxu0 %v557_v51 }
 0x167   : > { %613 = vmatpush.msra.mxu1 %v558_v52  ;;  %v354_v53 = vpop.permute.xlu1 %353 }
 0x168   : > { %v357_v55 = vsel %vm355_vm5, %v352_v37, %v354_v53  ;;  %594 = vmatpush.msra.mxu0 %v555_v54 }
 0x169   : > { %361 = vst [vmem:[#allocation3] sm:$0xf0] %v357_v55  ;;  %v556_v58 = vld [vmem:[#allocation3 + $0x10] sm:$0xff] }
 0x16a   : > { %595 = vmatpush.msra.mxu0 %v553_v57  ;;  %614 = vmatpush.msra.mxu1 %v556_v58 }
 0x16b   : > { %754 = vmatmul.msk.f32.vlgmr.msra.gmra.mxu0 %vm569_vm8, %v552_v56 }
 0x170   : > { %v554_v59 = vld [vmem:[#allocation3] sm:$0xff] }
 0x171   : > { %615 = vmatpush.msra.mxu1 %v554_v59 }
 0x172   : > { %756 = vmatmul.msk.f32.vlgmr.msra.gmra.mxu1 %vm569_vm8, %v552_v56 }
 0x1e8   : > { %v597_v61 = vpop.f32.mrf.mxu0 }
 0x1e9   : > { %v598_v62 = vadd.f32 %v597_v61, %v567_v60 }
 0x1eb   : > { %v620_v63 = vmax.f32 %v598_v62, 0.0 }
 0x1ed   : > { %v633_v0 = vrot.slane %v620_v63, 4 }
 0x1ef   : > { %637 = vst [vmem:[%s944_s24] sm:$0xf0] %v633_v0  ;;  %v617_v1 = vpop.f32.mrf.mxu1 }
 0x1f0   : > { %639 = vst [vmem:[%s944_s24 + $0x10] sm:$0xf] %v633_v0  ;;  %v618_v2 = vadd.f32 %v617_v1, %v567_v60 }
 0x1f2   : > { %v621_v3 = vmax.f32 %v618_v2, 0.0 }
 0x1f4   : > { %v634_v4 = vrot.slane %v621_v3, 4 }
 0x1f6   : > { %638 = vst [vmem:[%s944_s24 + $0x8] sm:$0xf0] %v634_v4 }
 0x1f7   : > { %640 = vst [vmem:[%s944_s24 + $0x18] sm:$0xf] %v634_v4 }
 0x1f8 PF: > { %s15_s20 = sadd.s32 1, %s821_s20   ;;  %s1023_s18 = smov %s817_s19 }
 0x1f9   : > { %p12_p5 = scmp.ge.s32.totalorder %s15_s20, 4   ;;  %s1024_s19 = smov %s1026_s21 }
 0x1fb   :  { %14 = sbr.rel (!%p12_p5) target bundleno = 2 (0x2), region = 83 }

</bundles_post_ra>
